<compile_context>
chip_gen: v6e
topology: v6e:2x2x1
jax: 0.10.0
libtpu: 0.0.40
codegen_flags: <defaults>
</compile_context>

<pallas_src>
import functools
import numpy as np
import jax
import jax.numpy as jnp
from jax import lax
from jax.experimental import pallas as pl
from jax.experimental.pallas import tpu as pltpu


def _round_up(x, m):
    return (x + m - 1) // m * m


_MIB = 1024 * 1024
_SINGLE_K_BUDGET = 30 * _MIB     # if whole-K buffers fit here, collapse K
_VMEM_LIMIT_MIN = 16 * _MIB
_VMEM_LIMIT_MAX = 48 * _MIB      # leave headroom under v7x's 64 MiB VMEM


# ---------------------------------------------------------------------------
# Pallas kernels: conv-as-single-matmul
# ---------------------------------------------------------------------------
def _conv_mm_kernel_1k(p_ref, w_ref, b_ref, o_ref, *, negative_slope):
    # Whole contraction in one grid step: plain dot + fused bias/LeakyReLU.
    y = jnp.dot(p_ref[...], w_ref[...], preferred_element_type=jnp.float32)
    y = y + b_ref[...]
    if negative_slope is not None:
        y = jnp.where(y >= 0, y, negative_slope * y)
    o_ref[...] = y.astype(o_ref.dtype)


def _conv_mm_kernel_multik(p_ref, w_ref, b_ref, o_ref, acc_ref, *,
                           negative_slope):
    # Fallback for very large contractions: accumulate in an f32 VMEM scratch
    # (avoids the per-step o_ref read-modify-write), epilogue on the last step.
    k = pl.program_id(2)

    @pl.when(k == 0)
    def _():
        acc_ref[...] = jnp.zeros_like(acc_ref)

    acc_ref[...] += jnp.dot(p_ref[...], w_ref[...],
                            preferred_element_type=jnp.float32)

    @pl.when(k == pl.num_programs(2) - 1)
    def _():
        y = acc_ref[...] + b_ref[...]
        if negative_slope is not None:
            y = jnp.where(y >= 0, y, negative_slope * y)
        o_ref[...] = y.astype(o_ref.dtype)


def conv3d_pallas(x, w, b, stride, padding, negative_slope=None,
                  out_dtype=jnp.bfloat16, *, tm=256, tk=2048, tn=128):
    """3-D conv + optional bias + optional LeakyReLU.

    x: (D, H, W, Cin) channels-last (N=1 squeezed); any float dtype.
    w: (Cout, Cin, KT, KH, KW) (PyTorch Conv3d weight layout)
    b: (Cout,) or None
    """
    D, H, W, Cin = x.shape
    Cout, _, KT, KH, KW = w.shape
    st, sh, sw = stride
    pt, ph, pw = padding
    Dout = (D + 2 * pt - KT) // st + 1
    Hout = (H + 2 * ph - KH) // sh + 1
    Wout = (W + 2 * pw - KW) // sw + 1
    M = Dout * Hout * Wout
    K = KT * KH * KW
    Kc = K * Cin

    # im2col in bf16, taps folded into the contraction axis -> (M, K*Cin).
    # TODO(synk): for large inputs, extract taps in-kernel from a resident
    # padded activation (memory_space=pl.ANY + manual DMA) instead of
    # materializing the K*Cin-wide im2col slab through HBM each layer.
    xp = jnp.pad(x.astype(jnp.bfloat16), ((pt, pt), (ph, ph), (pw, pw), (0, 0)))
    taps = []
    for kt in range(KT):
        for kh in range(KH):
            for kw in range(KW):
                taps.append(lax.slice(
                    xp,
                    (kt, kh, kw, 0),
                    (kt + (Dout - 1) * st + 1,
                     kh + (Hout - 1) * sh + 1,
                     kw + (Wout - 1) * sw + 1,
                     Cin),
                    (st, sh, sw, 1)))                   # (Dout, Hout, Wout, Cin)
    patches = jnp.stack(taps, axis=3).reshape(M, Kc)    # tap-major, Cin minor

    wk = jnp.transpose(w, (2, 3, 4, 1, 0)).reshape(Kc, Cout).astype(jnp.bfloat16)
    bias = (jnp.zeros((Cout,), jnp.float32) if b is None
            else b.astype(jnp.float32))

    out_bytes = jnp.dtype(out_dtype).itemsize
    tm_eff = min(tm, _round_up(M, 16))
    Np = _round_up(Cout, tn)
    tn_eff = min(tn, Np)

    # K tiling: collapse the whole contraction into one grid step whenever the
    # (double-buffered) whole-K tiles fit the VMEM budget.  This always holds
    # for the Discriminator layer shapes (Kc <= 9600, tiles <= ~6 MiB) and
    # removes all per-K-step grid overhead.
    Kc128 = _round_up(Kc, 128)

    def _need(tk_):
        return (2 * (tm_eff * tk_ + tk_ * tn_eff) * 2        # bf16 inputs x2 buf
                + 2 * tm_eff * tn_eff * out_bytes             # output x2 buf
                + tm_eff * tn_eff * 4                         # f32 accumulator
                + 2 * tn_eff * 4)                             # bias

    if _need(Kc128) <= _SINGLE_K_BUDGET:
        tk_eff = Kc128
    else:
        tk_eff = min(_round_up(min(tk, Kc128), 128), Kc128)

    Mp = _round_up(M, tm_eff)
    Kp = _round_up(Kc, tk_eff)

    patches = jnp.pad(patches, ((0, Mp - M), (0, Kp - Kc)))
    wk = jnp.pad(wk, ((0, Kp - Kc), (0, Np - Cout)))
    bias = jnp.pad(bias, (0, Np - Cout)).reshape(1, Np)

    vmem_bytes = int(min(max(int(_need(tk_eff) * 1.5), _VMEM_LIMIT_MIN),
                         _VMEM_LIMIT_MAX))

    n_ksteps = Kp // tk_eff
    if n_ksteps == 1:
        kernel = functools.partial(_conv_mm_kernel_1k,
                                   negative_slope=negative_slope)
        grid_spec = pltpu.PrefetchScalarGridSpec(
            num_scalar_prefetch=0,
            grid=(Mp // tm_eff, Np // tn_eff),
            in_specs=[
                pl.BlockSpec((tm_eff, tk_eff), lambda i, j: (i, 0)),
                pl.BlockSpec((tk_eff, tn_eff), lambda i, j: (0, j)),
                pl.BlockSpec((1, tn_eff), lambda i, j: (0, j)),
            ],
            out_specs=pl.BlockSpec((tm_eff, tn_eff), lambda i, j: (i, j)))
        semantics = ("parallel", "parallel")
    else:
        kernel = functools.partial(_conv_mm_kernel_multik,
                                   negative_slope=negative_slope)
        grid_spec = pltpu.PrefetchScalarGridSpec(
            num_scalar_prefetch=0,
            grid=(Mp // tm_eff, Np // tn_eff, n_ksteps),
            in_specs=[
                pl.BlockSpec((tm_eff, tk_eff), lambda i, j, k: (i, k)),
                pl.BlockSpec((tk_eff, tn_eff), lambda i, j, k: (k, j)),
                pl.BlockSpec((1, tn_eff), lambda i, j, k: (0, j)),
            ],
            out_specs=pl.BlockSpec((tm_eff, tn_eff), lambda i, j, k: (i, j)),
            scratch_shapes=[pltpu.VMEM((tm_eff, tn_eff), jnp.float32)])
        semantics = ("parallel", "parallel", "arbitrary")

    out = pl.pallas_call(
        kernel,
        out_shape=jax.ShapeDtypeStruct((Mp, Np), out_dtype),
        grid_spec=grid_spec,
        compiler_params=pltpu.CompilerParams(
            dimension_semantics=semantics,
            vmem_limit_bytes=vmem_bytes),
    )(patches, wk, bias)

    return out[:M, :Cout].reshape(Dout, Hout, Wout, Cout)


# ---------------------------------------------------------------------------
# Parameter construction (deterministic, synthetic)
# ---------------------------------------------------------------------------
def spectral_normalize(w, n_iter=30, eps=1e-12):
    # TODO(synk): PyTorch's spectral_norm does 1 power iteration per forward
    # from a persistent random `u` buffer; with synthetic weights we run a
    # converged power iteration instead (same semantics: w / sigma_max).
    cout = w.shape[0]
    wm = w.reshape(cout, -1).astype(jnp.float32)
    u = jnp.full((cout,), 1.0 / np.sqrt(cout), jnp.float32)
    for _ in range(n_iter):
        v = wm.T @ u
        v = v / (jnp.linalg.norm(v) + eps)
        u = wm @ v
        u = u / (jnp.linalg.norm(u) + eps)
    sigma = u @ (wm @ v)
    return w / sigma


def init_discriminator_params(key, in_channels=3, nf=32):
    # (cout, cin, padding, spectral_norm, has_bias, leaky_slope)
    cfgs = [
        (nf * 1, in_channels, (1, 1, 1), True,  False, 0.2),
        (nf * 2, nf * 1,      (1, 2, 2), True,  False, 0.2),
        (nf * 4, nf * 2,      (1, 2, 2), True,  False, 0.2),
        (nf * 4, nf * 4,      (1, 2, 2), True,  False, 0.2),
        (nf * 4, nf * 4,      (1, 2, 2), True,  False, 0.2),
        (nf * 4, nf * 4,      (1, 2, 2), False, True,  None),
    ]
    params = []
    for cout, cin, pad, sn, has_bias, leaky in cfgs:
        key, wkey = jax.random.split(key)
        # init_weights(init_type='normal', gain=0.02): N(0, 0.02), zero bias
        w = 0.02 * jax.random.normal(wkey, (cout, cin, 3, 5, 5), jnp.float32)
        if sn:
            w = spectral_normalize(w)
        b = jnp.zeros((cout,), jnp.float32) if has_bias else None
        params.append(dict(w=w, b=b, stride=(1, 2, 2), pad=pad, leaky=leaky))
    return params


# ---------------------------------------------------------------------------
# Forward passes
# ---------------------------------------------------------------------------
def discriminator_forward(xs, params, use_sigmoid=False):
    # xs: (T, C, H, W); torch does transpose(0,1).unsqueeze(0) -> (1, C, T, H, W).
    # We go straight to channels-last (D=T, H, W, C) in one transpose and keep
    # activations in bf16 between layers; only the last layer emits f32.
    x = jnp.transpose(xs, (0, 2, 3, 1)).astype(jnp.bfloat16)
    # TODO(synk): fuse layers 3-6 (M <= 16) into a single pallas_call with all
    # their bf16 weights resident in VMEM and in-kernel im2col, removing the
    # remaining per-call launch + XLA-glue overhead between the tiny deep layers.
    n = len(params)
    for li, p in enumerate(params):
        out_dtype = jnp.float32 if li == n - 1 else jnp.bfloat16
        x = conv3d_pallas(x, p["w"], p["b"], p["stride"], p["pad"], p["leaky"],
                          out_dtype=out_dtype)
    feat = x                                            # (D, H, W, Cout), f32
    if use_sigmoid:
        feat = jax.nn.sigmoid(feat)
    # channels-last -> torch's transpose(feat, 1, 2): (1, D, Cout, H, W)
    return jnp.transpose(feat, (0, 3, 1, 2))[None]


def discriminator_forward_ref(xs, params, use_sigmoid=False, bf16_operands=False):
    """Pure-JAX reference. bf16_operands=True matches the kernel's MXU
    contract (bf16 operands, f32 accumulation) for a tight correctness check;
    bf16_operands=False is the full-f32 spec reference."""
    x = jnp.transpose(xs, (1, 0, 2, 3))[None]
    for p in params:
        xin, w = x, p["w"]
        if bf16_operands:
            xin = xin.astype(jnp.bfloat16)
            w = w.astype(jnp.bfloat16)
            prec = None
        else:
            prec = jax.lax.Precision.HIGHEST
        x = lax.conv_general_dilated(
            xin, w, window_strides=p["stride"],
            padding=[(q, q) for q in p["pad"]],
            dimension_numbers=("NCDHW", "OIDHW", "NCDHW"),
            preferred_element_type=jnp.float32,
            precision=prec)
        if p["b"] is not None:
            x = x + p["b"][None, :, None, None, None]
        if p["leaky"] is not None:
            x = jnp.where(x >= 0, x, p["leaky"] * x)
    if use_sigmoid:
        x = jax.nn.sigmoid(x)
    return jnp.transpose(x, (0, 2, 1, 3, 4))


if __name__ == "__main__":
    key = jax.random.PRNGKey(0)
    pkey, xkey = jax.random.split(key)

    params = init_discriminator_params(pkey, in_channels=3, nf=32)

    # Small video clip: T=4 frames, C=3 channels, 16x16 spatial.
    xs = jax.random.normal(xkey, (4, 3, 16, 16), jnp.float32)   # (T, C, H, W)

    out = discriminator_forward(xs, params, use_sigmoid=False)
    out = jax.block_until_ready(out)
    assert out.shape == (1, 4, 128, 1, 1), out.shape

    # Tight check vs. a reference with the same bf16-operand / f32-accumulate
    # contract (verifies the kernel's im2col, matmul, bias, LeakyReLU).
    ref_bf16 = discriminator_forward_ref(xs, params, bf16_operands=True)
    np.testing.assert_allclose(np.asarray(out), np.asarray(ref_bf16),
                               rtol=1e-2, atol=1e-3)

    # Loose check vs. the full-f32 spec reference (tolerance accounts for
    # bf16 operand/intermediate quantization accumulated across 6 conv layers).
    ref_f32 = discriminator_forward_ref(xs, params, bf16_operands=False)
    np.testing.assert_allclose(np.asarray(out), np.asarray(ref_f32),
                               rtol=1e-1, atol=5e-2)

    print("KERNEL_OK")
</pallas_src>

<mosaic_0001>
module attributes {stable_mosaic.version = 11 : i64} {
  func.func @_conv_mm_kernel_1k(%arg0: i32, %arg1: i32, %arg2: memref<208x256xbf16, #tpu.memory_space<vmem>>, %arg3: memref<256x128xbf16, #tpu.memory_space<vmem>>, %arg4: memref<1x128xf32, #tpu.memory_space<vmem>>, %arg5: memref<208x128xbf16, #tpu.memory_space<vmem>>) attributes {dimension_semantics = [#tpu.dimension_semantics<parallel>, #tpu.dimension_semantics<parallel>], iteration_bounds = array<i64: 1, 1>, scalar_prefetch = 0 : i64, scratch_operands = 0 : i64, tpu.core_type = #tpu.core_type<tc>, window_params = [{transform_indices = @transform_0, window_bounds = array<i64: 208, 256>}, {transform_indices = @transform_1, window_bounds = array<i64: 256, 128>}, {transform_indices = @transform_2, window_bounds = array<i64: 1, 128>}, {transform_indices = @transform_3, window_bounds = array<i64: 208, 128>}]} {
    %c0 = arith.constant 0 : index
    %c0_0 = arith.constant 0 : index
    %0 = vector.load %arg2[%c0, %c0_0] : memref<208x256xbf16, #tpu.memory_space<vmem>>, vector<208x256xbf16>
    %c0_1 = arith.constant 0 : index
    %c0_2 = arith.constant 0 : index
    %1 = vector.load %arg3[%c0_1, %c0_2] : memref<256x128xbf16, #tpu.memory_space<vmem>>, vector<256x128xbf16>
    %cst = arith.constant dense<0.000000e+00> : vector<208x128xf32>
    %2 = tpu.matmul %0, %1, %cst {dimension_numbers = #tpu.dot_dimension_numbers<[1], [0], [0], [1], [0, 0, 1, 1], [], []>} : vector<208x256xbf16>, vector<256x128xbf16>, vector<208x128xf32> -> vector<208x128xf32>
    %c0_3 = arith.constant 0 : index
    %c0_4 = arith.constant 0 : index
    %3 = vector.load %arg4[%c0_3, %c0_4] : memref<1x128xf32, #tpu.memory_space<vmem>>, vector<1x128xf32>
    %4 = vector.broadcast %3 : vector<1x128xf32> to vector<208x128xf32>
    %5 = arith.addf %2, %4 : vector<208x128xf32>
    %cst_5 = arith.constant 0.000000e+00 : f32
    %6 = vector.broadcast %cst_5 : f32 to vector<208x128xf32>
    %7 = arith.cmpf oge, %5, %6 : vector<208x128xf32>
    %cst_6 = arith.constant 2.000000e-01 : f32
    %8 = vector.broadcast %cst_6 : f32 to vector<208x128xf32>
    %9 = arith.mulf %8, %5 : vector<208x128xf32>
    %10 = arith.select %7, %5, %9 : vector<208x128xi1>, vector<208x128xf32>
    %11 = arith.truncf %10 : vector<208x128xf32> to vector<208x128xbf16>
    %c0_7 = arith.constant 0 : index
    %c0_8 = arith.constant 0 : index
    %12 = vector.load %arg5[%c0_7, %c0_8] : memref<208x128xbf16, #tpu.memory_space<vmem>>, vector<208x128xbf16>
    tpu.vector_store %arg5[%c0_7, %c0_8], %11 {strides = array<i32>} : memref<208x128xbf16, #tpu.memory_space<vmem>>, vector<208x128xbf16>,
    return
  }
  func.func @transform_0(%arg0: i32, %arg1: i32) -> (i32, i32) {
    %c0_i32 = arith.constant 0 : i32
    %c0_i32_0 = arith.constant 0 : i32
    return %arg0, %c0_i32 : i32, i32
  }
  func.func @transform_1(%arg0: i32, %arg1: i32) -> (i32, i32) {
    %c0_i32 = arith.constant 0 : i32
    %c0_i32_0 = arith.constant 0 : i32
    return %c0_i32, %arg1 : i32, i32
  }
  func.func @transform_2(%arg0: i32, %arg1: i32) -> (i32, i32) {
    %c0_i32 = arith.constant 0 : i32
    %c0_i32_0 = arith.constant 0 : i32
    return %c0_i32, %arg1 : i32, i32
  }
  func.func @transform_3(%arg0: i32, %arg1: i32) -> (i32, i32) {
    %c0_i32 = arith.constant 0 : i32
    return %arg0, %arg1 : i32, i32
  }
}

</mosaic_0001>

<bundles_post_ra>
// kernel: tpu_custom_call.1
= control target key start
LH: loop header
LB: loop body
LE: loop exit
PB: predicated region body
PF: predicated region fallthrough
CT: control target
= control target key end

     0   :  { %8 = vsyncpa [#allocation3], 0  ;;  %s1181_s0 = inlined_call_operand.hbm [shape: bf16[208,256], index: 0, kind: input, shape index: {}]   ;;  %s1182_s1 = inlined_call_operand.hbm [shape: bf16[256,128], index: 1, kind: input, shape index: {}]   ;;  %s1183_s2 = inlined_call_operand.vmem [shape: f32[1,128], index: 2, kind: input, shape index: {}]   ;;  %s1184_s3 = inlined_call_operand.hbm [shape: bf16[208,128], index: 3, kind: output, shape index: {}]  }
   0x1   :  { %9 = vsyncpa [#allocation6], 0 }
   0x2   :  { %10 = vsyncpa [#allocation4], 0  ;;  %s1108_s12 = smov [#allocation2]  }
   0x3   :  { %s16_s13 = sshll.u32 %s1108_s12, 4  ;;  %s17_s13 = int_to_ptr.vmem [resolvable:$true] %s16_s13 }
   0x4   :  { %s1050_s14 = scalar_lea.vmem %s17_s13, 3328  ;;  %p1055_p1 = scmp.lt.s32.totalorder %s17_s13, %s17_s13 }
   0x5   :  { %p1051_p0 = scmp.ne.s32.totalorder %s17_s13, %s1050_s14  ;;  %p1056_p2 = scmp.lt.s32.totalorder %s1050_s14, %s1050_s14 }
   0x7   :  { %p1057_p3 = por %p1056_p2, %p1055_p1 }
   0x9   :  { %p1058_p4 = pnand %p1057_p3, %p1051_p0 }
   0xb   :  { %1061 = shalt.err (!%p1058_p4)
}
   0xc   :  { %s1109_s15 = smov 128   ;;  %s1110_s16 = smov 8  }
   0xd   :  { %22 = dma.hbm_to_vmem [thread:$0]  %s1181_s0, 3328, %s17_s13, [#allocation3], %s1109_s15, %s1109_s15, %s1110_s16  }
   0xe   :  { %s1111_s19 = smov [#allocation5]  }
   0xf   :  { %s28_s20 = sshll.u32 %s1111_s19, 4  ;;  %s29_s20 = int_to_ptr.vmem [resolvable:$true] %s28_s20 }
  0x10   :  { %s1070_s21 = scalar_lea.vmem %s29_s20, 2048  ;;  %p1075_p6 = scmp.lt.s32.totalorder %s29_s20, %s29_s20 }
  0x11   :  { %p1071_p5 = scmp.ne.s32.totalorder %s29_s20, %s1070_s21  ;;  %p1076_p7 = scmp.lt.s32.totalorder %s1070_s21, %s1070_s21 }
  0x13   :  { %p1077_p8 = por %p1076_p7, %p1075_p6 }
  0x15   :  { %p1078_p9 = pnand %p1077_p8, %p1071_p5 }
  0x17   :  { %1081 = shalt.err (!%p1078_p9)
}
  0x18   :  { %s1112_s22 = smov 64   ;;  %s1113_s23 = smov 4  }
  0x19   :  { %34 = dma.hbm_to_vmem [thread:$0]  %s1182_s1, 2048, %s29_s20, [#allocation6], %s1112_s22, %s1112_s22, %s1113_s23  }
  0x1a   :  { %1102 = dma.done.wait [#allocation3], 3328  }
  0x1b   :  { %1103 = vsyncadd [#allocation3], 4294963968 }
  0x1c   :  { %1104 = dma.done.wait [#allocation6], 2048  }
  0x1d   :  { %1105 = vsyncadd [#allocation6], 4294965248  ;;  %v987_v0 = vld [vmem:[#allocation5 + $0x78] sm:$0xff]   ;;  %v989_v2 = vld [vmem:[#allocation5 + $0x70] sm:$0xff]  }
  0x1e   :  { %v988_v1 = vld [vmem:[#allocation5 + $0x38] sm:$0xff]   ;;  %870 = vmatprep.subr.bf16.mxu0 %v987_v0  ;;  %964 = vmatprep.subr.bf16.mxu1 %v987_v0  ;;  %v990_v3 = vld [vmem:[#allocation5 + $0x30] sm:$0xff]   ;;  %v991_v4 = vld [vmem:[#allocation5 + $0x68] sm:$0xff]  }
  0x1f   :  { %871 = vmatpush3.bf16.msra.mxu0 %v988_v1  ;;  %972 = vmatpush3.bf16.msra.mxu1 %v988_v1  ;;  %v992_v5 = vld [vmem:[#allocation5 + $0x28] sm:$0xff]   ;;  %v993_v6 = vld [vmem:[#allocation5 + $0x60] sm:$0xff]   ;;  %v995_v8 = vld [vmem:[#allocation5 + $0x58] sm:$0xff]  }
  0x20   :  { %872 = vmatprep.subr.bf16.mxu0 %v989_v2  ;;  %965 = vmatprep.subr.bf16.mxu1 %v989_v2  ;;  %v994_v7 = vld [vmem:[#allocation5 + $0x20] sm:$0xff]   ;;  %v996_v9 = vld [vmem:[#allocation5 + $0x18] sm:$0xff]   ;;  %v997_v10 = vld [vmem:[#allocation5 + $0x50] sm:$0xff]  }
  0x21   :  { %v1005_v11 = vld [vmem:[#allocation2 + $0x4] ss:$8 sps:$4 sm:$0xff]   ;;  %v1008_v12 = vld [vmem:[#allocation2 + $0x74] ss:$8 sps:$4 sm:$0xff]   ;;  %v1003_v18 = vld [vmem:[#allocation2] ss:$8 sps:$4 sm:$0xff]  }
  0x22   :  { %v998_v13 = vld [vmem:[#allocation5 + $0x10] sm:$0xff]   ;;  %v999_v14 = vld [vmem:[#allocation5 + $0x48] sm:$0xff]   ;;  %367 = vmatprep.mubr.bf16.mxu0 %v1005_v11  ;;  %423 = vmatprep.mubr.bf16.mxu1 %v1008_v12  ;;  %v1001_v16 = vld [vmem:[#allocation5 + $0x40] sm:$0xff]  }
  0x23   :  { %873 = vmatpush3.bf16.msra.mxu0 %v990_v3  ;;  %973 = vmatpush3.bf16.msra.mxu1 %v990_v3  ;;  %v1000_v15 = vld [vmem:[#allocation5 + $0x8] sm:$0xff]   ;;  %v1002_v17 = vld [vmem:[#allocation5] sm:$0xff]   ;;  %v1011_v21 = vld [vmem:[#allocation2 + $0x84] ss:$8 sps:$4 sm:$0xff]  }
  0x24   :  { %874 = vmatprep.subr.bf16.mxu0 %v991_v4  ;;  %966 = vmatprep.subr.bf16.mxu1 %v991_v4  ;;  %v1006_v19 = vld [vmem:[#allocation2 + $0x70] ss:$8 sps:$4 sm:$0xff]   ;;  %v1009_v20 = vld [vmem:[#allocation2 + $0x14] ss:$8 sps:$4 sm:$0xff]   ;;  %v1014_v23 = vld [vmem:[#allocation2 + $0x80] ss:$8 sps:$4 sm:$0xff]  }
  0x25   :  { %v1013_v22 = vld [vmem:[#allocation2 + $0x10] ss:$8 sps:$4 sm:$0xff]   ;;  %v1015_v24 = vld [vmem:[#allocation2 + $0x24] ss:$8 sps:$4 sm:$0xff]   ;;  %v1017_v25 = vld [vmem:[#allocation2 + $0x94] ss:$8 sps:$4 sm:$0xff]  }
  0x26   :  { %v1019_v26 = vld [vmem:[#allocation2 + $0x20] ss:$8 sps:$4 sm:$0xff]   ;;  %v1020_v27 = vld [vmem:[#allocation2 + $0x90] ss:$8 sps:$4 sm:$0xff]   ;;  %v1021_v28 = vld [vmem:[#allocation2 + $0x34] ss:$8 sps:$4 sm:$0xff]  }
  0x27   :  { %875 = vmatpush3.bf16.msra.mxu0 %v992_v5  ;;  %974 = vmatpush3.bf16.msra.mxu1 %v992_v5  ;;  %v1023_v29 = vld [vmem:[#allocation2 + $0xa4] ss:$8 sps:$4 sm:$0xff]   ;;  %v1025_v30 = vld [vmem:[#allocation2 + $0x30] ss:$8 sps:$4 sm:$0xff]   ;;  %v1026_v31 = vld [vmem:[#allocation2 + $0xa0] ss:$8 sps:$4 sm:$0xff]  }
  0x28   :  { %876 = vmatprep.subr.bf16.mxu0 %v993_v6  ;;  %967 = vmatprep.subr.bf16.mxu1 %v993_v6  ;;  %v1027_v32 = vld [vmem:[#allocation2 + $0x44] ss:$8 sps:$4 sm:$0xff]   ;;  %v1029_v33 = vld [vmem:[#allocation2 + $0xb4] ss:$8 sps:$4 sm:$0xff]   ;;  %v1031_v34 = vld [vmem:[#allocation2 + $0x40] ss:$8 sps:$4 sm:$0xff]  }
  0x29   :  { %v1032_v35 = vld [vmem:[#allocation2 + $0xb0] ss:$8 sps:$4 sm:$0xff]   ;;  %v1033_v36 = vld [vmem:[#allocation2 + $0x54] ss:$8 sps:$4 sm:$0xff]   ;;  %v1035_v37 = vld [vmem:[#allocation2 + $0xc4] ss:$8 sps:$4 sm:$0xff]  }
  0x2a   :  { %v1037_v38 = vld [vmem:[#allocation2 + $0x50] ss:$8 sps:$4 sm:$0xff]   ;;  %v1038_v39 = vld [vmem:[#allocation2 + $0xc0] ss:$8 sps:$4 sm:$0xff]   ;;  %v1039_v40 = vld [vmem:[#allocation2 + $0x64] ss:$8 sps:$4 sm:$0xff]  }
  0x2b   :  { %877 = vmatpush3.bf16.msra.mxu0 %v994_v7  ;;  %975 = vmatpush3.bf16.msra.mxu1 %v994_v7  ;;  %v1041_v41 = vld [vmem:[#allocation2 + $0x60] ss:$8 sps:$4 sm:$0xff]  }
  0x2c   :  { %878 = vmatprep.subr.bf16.mxu0 %v995_v8  ;;  %968 = vmatprep.subr.bf16.mxu1 %v995_v8  ;;  %v1147_v46 = vld [vmem:[%s1183_s2] ss:$0 sm:$0xff]  ;;  %s1114_s2 = smov [#allocation7]  }
  0x2d   :  { %s685_s26 = sshll.u32 %s1114_s2, 4  ;;  %s686_s26 = int_to_ptr.vmem [resolvable:$true] %s685_s26 }
  0x2e   :  { %s1082_s27 = scalar_lea.vmem %s686_s26, 1664  ;;  %p1087_p11 = scmp.lt.s32.totalorder %s686_s26, %s686_s26 }
  0x2f   :  { %879 = vmatpush3.bf16.msra.mxu0 %v996_v9  ;;  %976 = vmatpush3.bf16.msra.mxu1 %v996_v9  ;;  %p1083_p10 = scmp.ne.s32.totalorder %s686_s26, %s1082_s27  ;;  %p1088_p12 = scmp.lt.s32.totalorder %s1082_s27, %s1082_s27 }
  0x30   :  { %880 = vmatprep.subr.bf16.mxu0 %v997_v10  ;;  %969 = vmatprep.subr.bf16.mxu1 %v997_v10 }
  0x31   :  { %p1089_p13 = por %p1088_p12, %p1087_p11 }
  0x33   :  { %881 = vmatpush3.bf16.msra.mxu0 %v998_v13  ;;  %977 = vmatpush3.bf16.msra.mxu1 %v998_v13  ;;  %p1090_p0 = pnand %p1089_p13, %p1083_p10 }
  0x34   :  { %882 = vmatprep.subr.bf16.mxu0 %v999_v14  ;;  %970 = vmatprep.subr.bf16.mxu1 %v999_v14 }
  0x37   :  { %883 = vmatpush3.bf16.msra.mxu0 %v1000_v15  ;;  %978 = vmatpush3.bf16.msra.mxu1 %v1000_v15 }
  0x38   :  { %884 = vmatprep.subr.bf16.mxu0 %v1001_v16  ;;  %971 = vmatprep.subr.bf16.mxu1 %v1001_v16 }
  0x3b   :  { %885 = vmatpush3.bf16.msra.mxu0 %v1002_v17  ;;  %979 = vmatpush3.bf16.msra.mxu1 %v1002_v17 }
  0x3e   :  { %368 = vmatmul.mubr.bf16.vlgmr.msra.gmra.mxu0 %v1003_v18  ;;  %424 = vmatmul.mubr.bf16.vlgmr.msra.gmra.mxu1 %v1006_v19 }
  0x3f   :  { %375 = vmatprep.mubr.bf16.mxu0 %v1009_v20  ;;  %431 = vmatprep.mubr.bf16.mxu1 %v1011_v21 }
  0x46   :  { %376 = vmatmul.mubr.bf16.gmra.mxu0 %v1013_v22  ;;  %432 = vmatmul.mubr.bf16.gmra.mxu1 %v1014_v23 }
  0x47   :  { %383 = vmatprep.mubr.bf16.mxu0 %v1015_v24  ;;  %439 = vmatprep.mubr.bf16.mxu1 %v1017_v25 }
  0x4e   :  { %384 = vmatmul.mubr.bf16.gmra.mxu0 %v1019_v26  ;;  %440 = vmatmul.mubr.bf16.gmra.mxu1 %v1020_v27 }
  0x4f   :  { %391 = vmatprep.mubr.bf16.mxu0 %v1021_v28  ;;  %447 = vmatprep.mubr.bf16.mxu1 %v1023_v29 }
  0x56   :  { %392 = vmatmul.mubr.bf16.gmra.mxu0 %v1025_v30  ;;  %448 = vmatmul.mubr.bf16.gmra.mxu1 %v1026_v31 }
  0x57   :  { %399 = vmatprep.mubr.bf16.mxu0 %v1027_v32  ;;  %455 = vmatprep.mubr.bf16.mxu1 %v1029_v33 }
  0x5e   :  { %400 = vmatmul.mubr.bf16.gmra.mxu0 %v1031_v34  ;;  %456 = vmatmul.mubr.bf16.gmra.mxu1 %v1032_v35 }
  0x5f   :  { %407 = vmatprep.mubr.bf16.mxu0 %v1033_v36  ;;  %463 = vmatprep.mubr.bf16.mxu1 %v1035_v37 }
  0x66   :  { %408 = vmatmul.mubr.bf16.gmra.mxu0 %v1037_v38  ;;  %464 = vmatmul.mubr.bf16.gmra.mxu1 %v1038_v39 }
  0x67   :  { %415 = vmatprep.mubr.bf16.mxu0 %v1039_v40 }
  0x6e   :  { %416 = vmatmul.mubr.bf16.gmra.mxu0 %v1041_v41 }
  0xfe   :  { %v886_v42 = vpop.f32.mrf.mxu0  ;;  %v928_v43 = vpop.f32.mrf.mxu1 }
 0x100   :  { %v887_v44 = vpop.f32.mrf.mxu0  ;;  %v929_v45 = vpop.f32.mrf.mxu1 }
 0x101   :  { %v888_v47 = vadd.f32 %v887_v44, %v886_v42  ;;  %v930_v48 = vadd.f32 %v929_v45, %v928_v43 }
 0x102   :  { %v889_v49 = vpop.f32.mrf.mxu0  ;;  %v931_v50 = vpop.f32.mrf.mxu1 }
 0x103   :  { %v426_v51 = vadd.f32 %v930_v48, %v1147_v46  ;;  %v370_v52 = vadd.f32 %v888_v47, %v1147_v46 }
 0x104   :  { %v890_v53 = vpop.f32.mrf.mxu0  ;;  %v932_v54 = vpop.f32.mrf.mxu1 }
 0x105   :  { %v512_v55 = vmul.f32 0.2, %v426_v51  ;;  %vm486_vm0 = vcmp.ge.f32.partialorder %v426_v51, 0.0  ;;  %v891_v56 = vadd.f32 %v890_v53, %v889_v49  ;;  %v933_v57 = vadd.f32 %v932_v54, %v931_v50 }
 0x106   :  { %v892_v58 = vpop.f32.mrf.mxu0  ;;  %v934_v59 = vpop.f32.mrf.mxu1  ;;  %v498_v60 = vmul.f32 0.2, %v370_v52  ;;  %vm472_vm1 = vcmp.ge.f32.partialorder %v370_v52, 0.0 }
 0x107   :  { %v373_v61 = vadd.f32 %v891_v56, %v1147_v46  ;;  %v429_v62 = vadd.f32 %v933_v57, %v1147_v46  ;;  %v538_v1 = vsel %vm486_vm0, %v426_v51, %v512_v55 }
 0x108   :  { %v893_v63 = vpop.f32.mrf.mxu0  ;;  %v935_v0 = vpop.f32.mrf.mxu1  ;;  %v524_v9 = vsel %vm472_vm1, %v370_v52, %v498_v60 }
 0x109   :  { %v894_v2 = vadd.f32 %v893_v63, %v892_v58  ;;  %v936_v3 = vadd.f32 %v935_v0, %v934_v59  ;;  %vm473_vm2 = vcmp.ge.f32.partialorder %v373_v61, 0.0  ;;  %v499_v4 = vmul.f32 0.2, %v373_v61 }
 0x10a   :  { %vm487_vm3 = vcmp.ge.f32.partialorder %v429_v62, 0.0  ;;  %v513_v5 = vmul.f32 0.2, %v429_v62  ;;  %v895_v6 = vpop.f32.mrf.mxu0  ;;  %v937_v7 = vpop.f32.mrf.mxu1 }
 0x10b   :  { %v434_v8 = vadd.f32 %v936_v3, %v1147_v46  ;;  %v525_v10 = vsel %vm473_vm2, %v373_v61, %v499_v4  ;;  %v378_v12 = vadd.f32 %v894_v2, %v1147_v46 }
 0x10c   :  { %v539_v11 = vsel %vm487_vm3, %v429_v62, %v513_v5  ;;  %v896_v13 = vpop.f32.mrf.mxu0  ;;  %v938_v14 = vpop.f32.mrf.mxu1  ;;  %v796_v15 = vpack.c.bf16 %v525_v10, %v524_v9 }
 0x10d   :  { %v831_v16 = vpack.c.bf16 %v539_v11, %v538_v1  ;;  %vm488_vm4 = vcmp.ge.f32.partialorder %v434_v8, 0.0  ;;  %v514_v17 = vmul.f32 0.2, %v434_v8  ;;  %v897_v18 = vadd.f32 %v896_v13, %v895_v6 }
 0x10e   :  { %v939_v19 = vadd.f32 %v938_v14, %v937_v7  ;;  %v898_v20 = vpop.f32.mrf.mxu0  ;;  %v940_v21 = vpop.f32.mrf.mxu1  ;;  %797 = vst [vmem:[#allocation7] sm:$0xff] %v796_v15   ;;  %v500_v22 = vmul.f32 0.2, %v378_v12  ;;  %vm474_vm5 = vcmp.ge.f32.partialorder %v378_v12, 0.0 }
 0x10f   :  { %864 = vst [vmem:[#allocation7 + $0x38] sm:$0xff] %v831_v16   ;;  %v381_v23 = vadd.f32 %v897_v18, %v1147_v46  ;;  %v540_v27 = vsel %vm488_vm4, %v434_v8, %v514_v17 }
 0x110   :  { %v437_v24 = vadd.f32 %v939_v19, %v1147_v46  ;;  %v899_v25 = vpop.f32.mrf.mxu0  ;;  %v941_v26 = vpop.f32.mrf.mxu1  ;;  %v526_v35 = vsel %vm474_vm5, %v378_v12, %v500_v22 }
 0x111   :  { %v900_v28 = vadd.f32 %v899_v25, %v898_v20  ;;  %v942_v29 = vadd.f32 %v941_v26, %v940_v21  ;;  %vm475_vm6 = vcmp.ge.f32.partialorder %v381_v23, 0.0  ;;  %v501_v30 = vmul.f32 0.2, %v381_v23 }
 0x112   :  { %vm489_vm7 = vcmp.ge.f32.partialorder %v437_v24, 0.0  ;;  %v515_v31 = vmul.f32 0.2, %v437_v24  ;;  %v901_v32 = vpop.f32.mrf.mxu0  ;;  %v943_v33 = vpop.f32.mrf.mxu1 }
 0x113   :  { %v442_v34 = vadd.f32 %v942_v29, %v1147_v46  ;;  %v527_v36 = vsel %vm475_vm6, %v381_v23, %v501_v30  ;;  %v386_v38 = vadd.f32 %v900_v28, %v1147_v46 }
 0x114   :  { %v541_v37 = vsel %vm489_vm7, %v437_v24, %v515_v31  ;;  %v902_v39 = vpop.f32.mrf.mxu0  ;;  %v944_v40 = vpop.f32.mrf.mxu1  ;;  %v801_v41 = vpack.c.bf16 %v527_v36, %v526_v35 }
 0x115   :  { %v836_v42 = vpack.c.bf16 %v541_v37, %v540_v27  ;;  %vm490_vm8 = vcmp.ge.f32.partialorder %v442_v34, 0.0  ;;  %v516_v43 = vmul.f32 0.2, %v442_v34  ;;  %v903_v44 = vadd.f32 %v902_v39, %v901_v32 }
 0x116   :  { %v945_v45 = vadd.f32 %v944_v40, %v943_v33  ;;  %v904_v47 = vpop.f32.mrf.mxu0  ;;  %v946_v48 = vpop.f32.mrf.mxu1  ;;  %858 = vst [vmem:[#allocation7 + $0x8] sm:$0xff] %v801_v41   ;;  %v502_v49 = vmul.f32 0.2, %v386_v38  ;;  %vm476_vm9 = vcmp.ge.f32.partialorder %v386_v38, 0.0 }
 0x117   :  { %865 = vst [vmem:[#allocation7 + $0x40] sm:$0xff] %v836_v42   ;;  %v389_v50 = vadd.f32 %v903_v44, %v1147_v46  ;;  %v542_v54 = vsel %vm490_vm8, %v442_v34, %v516_v43 }
 0x118   :  { %v445_v51 = vadd.f32 %v945_v45, %v1147_v46  ;;  %v905_v52 = vpop.f32.mrf.mxu0  ;;  %v947_v53 = vpop.f32.mrf.mxu1  ;;  %v528_v62 = vsel %vm476_vm9, %v386_v38, %v502_v49 }
 0x119   :  { %v906_v55 = vadd.f32 %v905_v52, %v904_v47  ;;  %v948_v56 = vadd.f32 %v947_v53, %v946_v48  ;;  %vm477_vm10 = vcmp.ge.f32.partialorder %v389_v50, 0.0  ;;  %v503_v57 = vmul.f32 0.2, %v389_v50 }
 0x11a   :  { %vm491_vm11 = vcmp.ge.f32.partialorder %v445_v51, 0.0  ;;  %v517_v58 = vmul.f32 0.2, %v445_v51  ;;  %v907_v59 = vpop.f32.mrf.mxu0  ;;  %v949_v60 = vpop.f32.mrf.mxu1 }
 0x11b   :  { %v450_v61 = vadd.f32 %v948_v56, %v1147_v46  ;;  %v529_v63 = vsel %vm477_vm10, %v389_v50, %v503_v57  ;;  %v394_v1 = vadd.f32 %v906_v55, %v1147_v46 }
 0x11c   :  { %v543_v0 = vsel %vm491_vm11, %v445_v51, %v517_v58  ;;  %v908_v2 = vpop.f32.mrf.mxu0  ;;  %v950_v3 = vpop.f32.mrf.mxu1  ;;  %v806_v4 = vpack.c.bf16 %v529_v63, %v528_v62 }
 0x11d   :  { %v841_v5 = vpack.c.bf16 %v543_v0, %v542_v54  ;;  %vm492_vm12 = vcmp.ge.f32.partialorder %v450_v61, 0.0  ;;  %v518_v6 = vmul.f32 0.2, %v450_v61  ;;  %v909_v7 = vadd.f32 %v908_v2, %v907_v59 }
 0x11e   :  { %v951_v8 = vadd.f32 %v950_v3, %v949_v60  ;;  %v910_v9 = vpop.f32.mrf.mxu0  ;;  %v952_v10 = vpop.f32.mrf.mxu1  ;;  %859 = vst [vmem:[#allocation7 + $0x10] sm:$0xff] %v806_v4   ;;  %v504_v11 = vmul.f32 0.2, %v394_v1  ;;  %vm478_vm13 = vcmp.ge.f32.partialorder %v394_v1, 0.0 }
 0x11f   :  { %866 = vst [vmem:[#allocation7 + $0x48] sm:$0xff] %v841_v5   ;;  %v397_v12 = vadd.f32 %v909_v7, %v1147_v46  ;;  %v544_v16 = vsel %vm492_vm12, %v450_v61, %v518_v6 }
 0x120   :  { %v453_v13 = vadd.f32 %v951_v8, %v1147_v46  ;;  %v911_v14 = vpop.f32.mrf.mxu0  ;;  %v953_v15 = vpop.f32.mrf.mxu1  ;;  %v530_v24 = vsel %vm478_vm13, %v394_v1, %v504_v11 }
 0x121   :  { %v912_v17 = vadd.f32 %v911_v14, %v910_v9  ;;  %v954_v18 = vadd.f32 %v953_v15, %v952_v10  ;;  %vm479_vm14 = vcmp.ge.f32.partialorder %v397_v12, 0.0  ;;  %v505_v19 = vmul.f32 0.2, %v397_v12 }
 0x122   :  { %vm493_vm15 = vcmp.ge.f32.partialorder %v453_v13, 0.0  ;;  %v519_v20 = vmul.f32 0.2, %v453_v13  ;;  %v913_v21 = vpop.f32.mrf.mxu0  ;;  %v955_v22 = vpop.f32.mrf.mxu1 }
 0x123   :  { %v458_v23 = vadd.f32 %v954_v18, %v1147_v46  ;;  %v531_v25 = vsel %vm479_vm14, %v397_v12, %v505_v19  ;;  %v402_v27 = vadd.f32 %v912_v17, %v1147_v46 }
 0x124   :  { %v545_v26 = vsel %vm493_vm15, %v453_v13, %v519_v20  ;;  %v914_v28 = vpop.f32.mrf.mxu0  ;;  %v956_v29 = vpop.f32.mrf.mxu1  ;;  %v811_v30 = vpack.c.bf16 %v531_v25, %v530_v24 }
 0x125   :  { %v846_v31 = vpack.c.bf16 %v545_v26, %v544_v16  ;;  %vm494_vm0 = vcmp.ge.f32.partialorder %v458_v23, 0.0  ;;  %v520_v32 = vmul.f32 0.2, %v458_v23  ;;  %v915_v33 = vadd.f32 %v914_v28, %v913_v21 }
 0x126   :  { %v957_v34 = vadd.f32 %v956_v29, %v955_v22  ;;  %v916_v35 = vpop.f32.mrf.mxu0  ;;  %v958_v36 = vpop.f32.mrf.mxu1  ;;  %860 = vst [vmem:[#allocation7 + $0x18] sm:$0xff] %v811_v30   ;;  %v506_v37 = vmul.f32 0.2, %v402_v27  ;;  %vm480_vm1 = vcmp.ge.f32.partialorder %v402_v27, 0.0 }
 0x127   :  { %867 = vst [vmem:[#allocation7 + $0x50] sm:$0xff] %v846_v31   ;;  %v405_v38 = vadd.f32 %v915_v33, %v1147_v46  ;;  %v546_v42 = vsel %vm494_vm0, %v458_v23, %v520_v32 }
 0x128   :  { %v461_v39 = vadd.f32 %v957_v34, %v1147_v46  ;;  %v917_v40 = vpop.f32.mrf.mxu0  ;;  %v959_v41 = vpop.f32.mrf.mxu1  ;;  %v532_v51 = vsel %vm480_vm1, %v402_v27, %v506_v37 }
 0x129   :  { %v918_v43 = vadd.f32 %v917_v40, %v916_v35  ;;  %v960_v44 = vadd.f32 %v959_v41, %v958_v36  ;;  %vm481_vm2 = vcmp.ge.f32.partialorder %v405_v38, 0.0  ;;  %v507_v45 = vmul.f32 0.2, %v405_v38 }
 0x12a   :  { %vm495_vm3 = vcmp.ge.f32.partialorder %v461_v39, 0.0  ;;  %v521_v47 = vmul.f32 0.2, %v461_v39  ;;  %v919_v48 = vpop.f32.mrf.mxu0  ;;  %v961_v49 = vpop.f32.mrf.mxu1 }
 0x12b   :  { %v466_v50 = vadd.f32 %v960_v44, %v1147_v46  ;;  %v533_v52 = vsel %vm481_vm2, %v405_v38, %v507_v45  ;;  %v410_v54 = vadd.f32 %v918_v43, %v1147_v46 }
 0x12c   :  { %v547_v53 = vsel %vm495_vm3, %v461_v39, %v521_v47  ;;  %v920_v55 = vpop.f32.mrf.mxu0  ;;  %v962_v56 = vpop.f32.mrf.mxu1  ;;  %v816_v57 = vpack.c.bf16 %v533_v52, %v532_v51 }
 0x12d   :  { %v851_v58 = vpack.c.bf16 %v547_v53, %v546_v42  ;;  %vm496_vm4 = vcmp.ge.f32.partialorder %v466_v50, 0.0  ;;  %v522_v59 = vmul.f32 0.2, %v466_v50  ;;  %v921_v60 = vadd.f32 %v920_v55, %v919_v48 }
 0x12e   :  { %v963_v61 = vadd.f32 %v962_v56, %v961_v49  ;;  %v922_v62 = vpop.f32.mrf.mxu0  ;;  %861 = vst [vmem:[#allocation7 + $0x20] sm:$0xff] %v816_v57   ;;  %v508_v63 = vmul.f32 0.2, %v410_v54  ;;  %vm482_vm5 = vcmp.ge.f32.partialorder %v410_v54, 0.0 }
 0x12f   :  { %868 = vst [vmem:[#allocation7 + $0x58] sm:$0xff] %v851_v58   ;;  %v413_v0 = vadd.f32 %v921_v60, %v1147_v46  ;;  %v548_v3 = vsel %vm496_vm4, %v466_v50, %v522_v59 }
 0x130   :  { %v469_v1 = vadd.f32 %v963_v61, %v1147_v46  ;;  %v923_v2 = vpop.f32.mrf.mxu0  ;;  %v534_v8 = vsel %vm482_vm5, %v410_v54, %v508_v63 }
 0x131   :  { %v924_v4 = vadd.f32 %v923_v2, %v922_v62  ;;  %vm483_vm6 = vcmp.ge.f32.partialorder %v413_v0, 0.0  ;;  %v509_v5 = vmul.f32 0.2, %v413_v0 }
 0x132   :  { %vm497_vm7 = vcmp.ge.f32.partialorder %v469_v1, 0.0  ;;  %v523_v6 = vmul.f32 0.2, %v469_v1  ;;  %v925_v7 = vpop.f32.mrf.mxu0 }
 0x133   :  { %v535_v9 = vsel %vm483_vm6, %v413_v0, %v509_v5  ;;  %v418_v11 = vadd.f32 %v924_v4, %v1147_v46 }
 0x134   :  { %v549_v10 = vsel %vm497_vm7, %v469_v1, %v523_v6  ;;  %v926_v12 = vpop.f32.mrf.mxu0  ;;  %v821_v13 = vpack.c.bf16 %v535_v9, %v534_v8 }
 0x135   :  { %v856_v14 = vpack.c.bf16 %v549_v10, %v548_v3  ;;  %v927_v15 = vadd.f32 %v926_v12, %v925_v7  ;;  %v510_v16 = vmul.f32 0.2, %v418_v11  ;;  %vm484_vm8 = vcmp.ge.f32.partialorder %v418_v11, 0.0 }
 0x136   :  { %862 = vst [vmem:[#allocation7 + $0x28] sm:$0xff] %v821_v13  }
 0x137   :  { %869 = vst [vmem:[#allocation7 + $0x60] sm:$0xff] %v856_v14   ;;  %v421_v17 = vadd.f32 %v927_v15, %v1147_v46  ;;  %v536_v19 = vsel %vm484_vm8, %v418_v11, %v510_v16 }
 0x139   :  { %vm485_vm9 = vcmp.ge.f32.partialorder %v421_v17, 0.0  ;;  %v511_v18 = vmul.f32 0.2, %v421_v17 }
 0x13b   :  { %v537_v20 = vsel %vm485_vm9, %v421_v17, %v511_v18 }
 0x13c   :  { %v826_v21 = vpack.c.bf16 %v537_v20, %v536_v19 }
 0x13e   :  { %863 = vst [vmem:[#allocation7 + $0x30] sm:$0xff] %v826_v21  }
 0x13f   :  { %1093 = shalt.err (!%p1090_p0)
}
 0x140   :  { %691 = dma.vmem_to_hbm [thread:$0]  %s686_s26, 1664, %s1184_s3, [#allocation4], %s1112_s22, %s1112_s22, %s1113_s23  }
 0x141   :  { %1106 = dma.done.wait [#allocation4], 1664  }
 0x142   :  { %1107 = vsyncadd [#allocation4], 4294965632 }
 0x143   :  { %695 = vsyncpa [#allocation3], 1 }
 0x144   :  { %696 = vsyncpa [#allocation6], 1 }
 0x145   :  { %697 = vsyncpa [#allocation4], 1 }

</bundles_post_ra>
